<compile_context>
chip_gen: v6e
topology: v6e:2x2x1
jax: 0.10.0
libtpu: 0.0.40
codegen_flags: <defaults>
</compile_context>

<pallas_src>
import jax
import jax.numpy as jnp
from jax.experimental import pallas as pl
from jax.experimental.pallas import tpu as pltpu  # noqa: F401  (TPU backend)


def sigmoid_model_kernel(x_ref, p_ref, o_ref):
    x = x_ref[...]                        # (1, n) samples on lanes
    slopes = p_ref[:, 0:1]                # (S, 1)
    scales = p_ref[:, 1:2]                # (S, 1)
    c = p_ref[:, 2:3]                     # (S, 1)
    d = p_ref[0:1, 3:4]                   # (1, 1) bias scalar

    scales2 = scales * scales             # scales ** 2
    z = x * slopes - c * slopes           # tensordot(x, slopes, 0) - c*slopes -> (S, n)
    sig = 0.5 * jnp.tanh(0.5 * z) + 0.5   # sigmoid via one EUP tanh
    y = jnp.sum(scales2 * sig, axis=0, keepdims=True) + d * d   # (1, n)

    # softmax(log(cat(y, flip(y)))) == cat(y, flip(y)) / (2 * sum(y_half))
    denom = 2.0 * jnp.sum(y, axis=1, keepdims=True)              # (1, 1)
    o_ref[...] = y / denom


def sigmoid_model_forward(x, slopes, scales, c, d, element_size):
    n = element_size // 2
    S = slopes.shape[0]

    x_half = x[:n].astype(jnp.float32).reshape(1, n)             # (1, n)
    params = jnp.stack(
        [slopes.astype(jnp.float32),
         scales.astype(jnp.float32),
         c.astype(jnp.float32),
         jnp.full((S,), d, dtype=jnp.float32)],
        axis=1,
    )                                                            # (S, 4), one DMA

    half = pl.pallas_call(
        sigmoid_model_kernel,
        out_shape=jax.ShapeDtypeStruct((1, n), jnp.float32),
        grid=(1,),
        in_specs=[
            pl.BlockSpec((1, n), lambda i: (0, 0)),
            pl.BlockSpec((S, 4), lambda i: (0, 0)),
        ],
        out_specs=pl.BlockSpec((1, n), lambda i: (0, 0)),
    )(x_half, params)

    half = half.reshape(n)
    # Mirror the (already correctly normalized) first half.
    return jnp.concatenate([half, half[::-1]], axis=0)


def reference(x, slopes, scales, c, d, element_size):
    """Pure-JAX transliteration of SigmoidModel.forward (float32)."""
    n = element_size // 2
    xh = x[:n]
    sc = scales * scales
    dd = d * d
    z = xh[:, None] * slopes[None, :] - c * slopes
    sig = 1.0 / (1.0 + jnp.exp(-z))
    y = jnp.sum(sc * sig, axis=1) + dd
    y = jnp.concatenate([y, y[::-1]])
    lg = jnp.log(y)
    return jax.nn.softmax(lg, axis=0)


if __name__ == "__main__":
    # Small, deterministic configuration (mirrors the module's __init__):
    element_size = 16          # forward uses x[:element_size // 2] -> 8 samples
    range_begin = 4.0
    sig_num = 8                # args.sig_num
    slope = 5.0                # args.slope
    bias = 0.5                 # args.bias

    key = jax.random.PRNGKey(0)
    kx, ks = jax.random.split(key)
    x = jax.random.uniform(kx, (element_size,), dtype=jnp.float32)
    # random_init=True branch: scales ~ U[0,1); slopes constant; c = linspace.
    scales = jax.random.uniform(ks, (sig_num,), dtype=jnp.float32)
    slopes = jnp.full((sig_num,), slope, dtype=jnp.float32)
    c = jnp.linspace(-range_begin, 0.0, sig_num, endpoint=False).astype(jnp.float32)
    d = jnp.float32(bias)

    out = sigmoid_model_forward(x, slopes, scales, c, d, element_size)
    out = jax.block_until_ready(out)

    ref = reference(x, slopes, scales, c, d, element_size)
    assert out.shape == (element_size,), out.shape
    assert jnp.allclose(out, ref, atol=1e-5, rtol=1e-5), (out, ref)
    assert jnp.allclose(jnp.sum(out), 1.0, atol=1e-5)   # softmax sums to 1

    print("KERNEL_OK")
</pallas_src>

<mosaic_0001>
module attributes {stable_mosaic.version = 11 : i64} {
  func.func @sigmoid_model_kernel(%arg0: i32, %arg1: memref<1x8xf32, #tpu.memory_space<vmem>>, %arg2: memref<8x4xf32, #tpu.memory_space<vmem>>, %arg3: memref<1x8xf32, #tpu.memory_space<vmem>>) attributes {dimension_semantics = [#tpu.dimension_semantics<arbitrary>], iteration_bounds = array<i64: 1>, scalar_prefetch = 0 : i64, scratch_operands = 0 : i64, tpu.core_type = #tpu.core_type<tc>, window_params = [{pipeline_mode = #tpu.pipeline_mode<synchronous>, transform_indices = @transform_0, window_bounds = array<i64: 1, 8>}, {pipeline_mode = #tpu.pipeline_mode<synchronous>, transform_indices = @transform_1, window_bounds = array<i64: 8, 4>}, {pipeline_mode = #tpu.pipeline_mode<synchronous>, transform_indices = @transform_2, window_bounds = array<i64: 1, 8>}]} {
    %c0 = arith.constant 0 : index
    %c0_0 = arith.constant 0 : index
    %0 = vector.load %arg1[%c0, %c0_0] : memref<1x8xf32, #tpu.memory_space<vmem>>, vector<1x8xf32>
    %c0_1 = arith.constant 0 : index
    %c0_2 = arith.constant 0 : index
    %1 = vector.load %arg2[%c0_1, %c0_2] : memref<8x4xf32, #tpu.memory_space<vmem>>, vector<8x1xf32>
    %c0_3 = arith.constant 0 : index
    %c1 = arith.constant 1 : index
    %2 = vector.load %arg2[%c0_3, %c1] : memref<8x4xf32, #tpu.memory_space<vmem>>, vector<8x1xf32>
    %c0_4 = arith.constant 0 : index
    %c2 = arith.constant 2 : index
    %3 = vector.load %arg2[%c0_4, %c2] : memref<8x4xf32, #tpu.memory_space<vmem>>, vector<8x1xf32>
    %c0_5 = arith.constant 0 : index
    %c3 = arith.constant 3 : index
    %4 = vector.load %arg2[%c0_5, %c3] : memref<8x4xf32, #tpu.memory_space<vmem>>, vector<1x1xf32>
    %5 = arith.mulf %2, %2 : vector<8x1xf32>
    %6 = vector.broadcast %0 : vector<1x8xf32> to vector<8x8xf32>
    %7 = vector.broadcast %1 : vector<8x1xf32> to vector<8x8xf32>
    %8 = arith.mulf %6, %7 : vector<8x8xf32>
    %9 = arith.mulf %3, %1 : vector<8x1xf32>
    %10 = vector.broadcast %9 : vector<8x1xf32> to vector<8x8xf32>
    %11 = arith.subf %8, %10 : vector<8x8xf32>
    %cst = arith.constant 5.000000e-01 : f32
    %12 = vector.broadcast %cst : f32 to vector<8x8xf32>
    %13 = arith.mulf %12, %11 : vector<8x8xf32>
    %14 = math.tanh %13 : vector<8x8xf32>
    %cst_6 = arith.constant 5.000000e-01 : f32
    %15 = vector.broadcast %cst_6 : f32 to vector<8x8xf32>
    %16 = arith.mulf %15, %14 : vector<8x8xf32>
    %cst_7 = arith.constant 5.000000e-01 : f32
    %17 = vector.broadcast %cst_7 : f32 to vector<8x8xf32>
    %18 = arith.addf %16, %17 : vector<8x8xf32>
    %19 = vector.broadcast %5 : vector<8x1xf32> to vector<8x8xf32>
    %20 = arith.mulf %19, %18 : vector<8x8xf32>
    %cst_8 = arith.constant dense<0.000000e+00> : vector<8xf32>
    %21 = vector.multi_reduction <add>, %20, %cst_8 [0] : vector<8x8xf32> to vector<8xf32>
    %22 = vector.shape_cast %21 : vector<8xf32> to vector<1x8xf32>
    %23 = arith.mulf %4, %4 : vector<1x1xf32>
    %24 = vector.broadcast %23 : vector<1x1xf32> to vector<1x8xf32>
    %25 = arith.addf %22, %24 : vector<1x8xf32>
    %cst_9 = arith.constant dense<0.000000e+00> : vector<1xf32>
    %26 = vector.multi_reduction <add>, %25, %cst_9 [1] : vector<1x8xf32> to vector<1xf32>
    %27 = vector.shape_cast %26 : vector<1xf32> to vector<1x1xf32>
    %cst_10 = arith.constant 2.000000e+00 : f32
    %28 = vector.broadcast %cst_10 : f32 to vector<1x1xf32>
    %29 = arith.mulf %28, %27 : vector<1x1xf32>
    %30 = vector.broadcast %29 : vector<1x1xf32> to vector<1x8xf32>
    %31 = arith.divf %25, %30 : vector<1x8xf32>
    %c0_11 = arith.constant 0 : index
    %c0_12 = arith.constant 0 : index
    %32 = vector.load %arg3[%c0_11, %c0_12] : memref<1x8xf32, #tpu.memory_space<vmem>>, vector<1x8xf32>
    tpu.vector_store %arg3[%c0_11, %c0_12], %31 {strides = array<i32>} : memref<1x8xf32, #tpu.memory_space<vmem>>, vector<1x8xf32>,
    return
  }
  func.func @transform_0(%arg0: i32) -> (i32, i32) {
    %c0_i32 = arith.constant 0 : i32
    %c0_i32_0 = arith.constant 0 : i32
    %c0_i32_1 = arith.constant 0 : i32
    return %c0_i32, %c0_i32_0 : i32, i32
  }
  func.func @transform_1(%arg0: i32) -> (i32, i32) {
    %c0_i32 = arith.constant 0 : i32
    %c0_i32_0 = arith.constant 0 : i32
    %c0_i32_1 = arith.constant 0 : i32
    return %c0_i32, %c0_i32_0 : i32, i32
  }
  func.func @transform_2(%arg0: i32) -> (i32, i32) {
    %c0_i32 = arith.constant 0 : i32
    %c0_i32_0 = arith.constant 0 : i32
    %c0_i32_1 = arith.constant 0 : i32
    return %c0_i32, %c0_i32_0 : i32, i32
  }
}

</mosaic_0001>

<bundles_post_ra>
// kernel: tpu_custom_call.1
= control target key start
LH: loop header
LB: loop body
LE: loop exit
PB: predicated region body
PF: predicated region fallthrough
CT: control target
= control target key end

     0   :  { %s123_s11 = smov 2   ;;  %v124_v1 = vmov 2   ;;  %s156_s0 = inlined_call_operand.vmem [shape: f32[1,8], index: 0, kind: input, shape index: {}]   ;;  %s157_s1 = inlined_call_operand.vmem [shape: f32[8,4], index: 1, kind: input, shape index: {}]   ;;  %s158_s2 = inlined_call_operand.hbm [shape: f32[1,8], index: 2, kind: output, shape index: {}]  }
   0x1   :  { %v13_v0 = vld [vmem:[%s157_s1] sm:$0xff]  ;;  %93 = vset.pattern.permute.xlu1 %v124_v1 }
   0x2   :  { %28 = vrot.lane.b32.xlu0 %v13_v0, %s123_s11 }
   0x3   :  { %7 = vsyncpa [#allocation3], 0  ;;  %v125_v2 = vmov 0   ;;  %v126_v3 = vmov 3   ;;  %v15_v6 = vmul.f32 %v13_v0, %v13_v0  ;;  %v14_v7 = vld [vmem:[%s157_s1] sm:$0x1] }
   0x4   :  { %92 = vset.pattern.permute.xlu0 %v125_v2  ;;  %v127_v8 = vmov 1   ;;  %v56_v9 = vmul.f32 %v14_v7, %v14_v7  ;;  %v85_v11 = vld [vmem:[%s156_s0] ss:$0 sm:$0xff]  ;;  %vm48_vm0 = vcmask 64512   ;;  %vm63_vm1 = vcmask 57344   ;;  %s128_s0 = smov [#allocation2]  }
   0x5   :  { %s77_s1 = sshll.u32 %s128_s0, 4  ;;  %s78_s1 = int_to_ptr.vmem [resolvable:$true] %s77_s1 }
   0x6   :  { %24 = vperm.xlu0 %92, %v13_v0   ;;  %s101_s16 = scalar_lea.vmem %s78_s1, 16  ;;  %s105_s17 = scalar_lea.vmem %s78_s1, 32 }
   0x7   :  { %p102_p0 = scmp.ne.s32.totalorder %s78_s1, %s101_s16  ;;  %p106_p1 = scmp.lt.s32.totalorder %s78_s1, %s78_s1 }
   0x8   :  { %p107_p2 = scmp.lt.s32.totalorder %s105_s17, %s101_s16 }
   0xa   :  { %96 = vset.pattern.permute.xlu0 %v126_v3  ;;  %p108_p3 = por %p107_p2, %p106_p1 }
   0xc   :  { %p109_p4 = pnand %p108_p3, %p102_p0 }
  0x74   :  { %v29_v4 = vpop.permute.xlu0 %28 }
  0x75   :  { %v31_v5 = vmul.f32 %v29_v4, %v13_v0 }
  0x77   :  { %34 = vperm.xlu1 %93, %v31_v5  }
  0x7b   :  { %94 = vset.pattern.permute.xlu1 %v127_v8 }
  0x7c   :  { %44 = vperm.xlu1 %94, %v15_v6  }
  0x80   :  { %95 = vset.pattern.permute.xlu1 %v126_v3 }
  0x81   :  { %59 = vperm.xlu1 %95, %v56_v9   ;;  %v25_v10 = vpop.permute.xlu0 %24 }
  0x82   :  { %v27_v12 = vmul.f32 %v85_v11, %v25_v10 }
  0xf2   :  { %v35_v13 = vpop.permute.xlu1 %34 }
  0xf3   :  { %v37_v14 = vsub.f32 %v27_v12, %v35_v13 }
  0xf5   :  { %v38_v15 = vmul.f32 0.5, %v37_v14 }
  0xf7   :  { %97 = vtanh.f32 %v38_v15  ;;  %v45_v18 = vpop.permute.xlu1 %44 }
  0xfc   :  { %v60_v27 = vpop.permute.xlu1 %59 }
 0x104   :  { %v98_v16 = vpop.eup %97 }
 0x105   :  { %v40_v17 = vmul.f32 0.5, %v98_v16 }
 0x107   :  { %v41_v19 = vadd.f32 0.5, %v40_v17 }
 0x109   :  { %v47_v20 = vmul.f32 %v45_v18, %v41_v19 }
 0x10b   :  { %v49_v21 = vsel %vm48_vm0, %v47_v20, 0.0 }
 0x10c   :  { %v50_v22 = vrot.slane %v49_v21, 4 }
 0x10e   :  { %v51_v23 = vadd.f32 %v50_v22, %v49_v21 }
 0x110   :  { %v52_v24 = vrot.slane %v51_v23, 2 }
 0x112   :  { %v53_v25 = vadd.f32 %v52_v24, %v51_v23 }
 0x114   :  { %v54_v26 = vrot.slane %v53_v25, 1 }
 0x116   :  { %v55_v28 = vadd.f32 %v54_v26, %v53_v25 }
 0x118   :  { %v62_v29 = vadd.f32 %v60_v27, %v55_v28 }
 0x11a   :  { %v64_v30 = vsel %vm63_vm1, %v62_v29, 0.0 }
 0x11b   :  { %65 = vadd.xlane.f32.xlu0 %v64_v30 }
 0x1a4   :  { %v66_v31 = vpop.xlane.xlu0 %65 }
 0x1a5   :  { %v67_v32 = vmul.f32 2.0, %v66_v31 }
 0x1a7   :  { %99 = vrcp.f32 %v67_v32 }
 0x1b4   :  { %v100_v33 = vpop.eup %99 }
 0x1b5   :  { %v69_v34 = vmul.f32 %v100_v33, %v62_v29 }
 0x1b7   :  { %70 = vst.msk [vmem:[#allocation2] sm:$0x1] %vm63_vm1, %v69_v34 }
 0x1b8   :  { %112 = shalt.err (!%p109_p4)
}
 0x1b9   :  { %80 = dma.vmem_to_hbm [thread:$0]  %s78_s1, 16, %s158_s2, [#allocation3]  }
 0x1ba   :  { %121 = dma.done.wait [#allocation3], 16  }
 0x1bb   :  { %122 = vsyncadd [#allocation3], 4294967280 }
 0x1bc   :  { %84 = vsyncpa [#allocation3], 1 }

</bundles_post_ra>
